<compile_context>
chip_gen: v7x
topology: tpu7x:2x2x1
jax: 0.10.0
libtpu: 0.0.40
codegen_flags: <defaults>
</compile_context>

<pallas_src>
import functools

import jax
import jax.numpy as jnp
from jax.experimental import pallas as pl
from jax.experimental.pallas import tpu as pltpu

LN_EPS = 1e-5            # torch.nn.LayerNorm default
GELU_APPROXIMATE = True  # tanh-GELU (EUP); False -> exact erf (matches nn.GELU bitwise-closer)


# ----------------------------------------------------------------------------- utils


def _round_up(x, m):
    return ((x + m - 1) // m) * m


def _physical_vmem_bytes():
    try:
        return int(pltpu.get_tpu_info().vmem_capacity_bytes)
    except Exception:
        return 64 * 1024 * 1024  # conservative (v7x-sized) fallback


def _vmem_limit(bytes_needed):
    # <= 3/4 of physical VMEM: ~48 MiB on v7x (64 MiB parts), ~96 MiB on v5e/v6e (128 MiB).
    cap = (_physical_vmem_bytes() * 3) // 4
    want = max(int(bytes_needed), 32 * 1024 * 1024)
    return int(max(min(cap, want), 16 * 1024 * 1024))


def _layernorm(x, gamma, beta):
    x = x.astype(jnp.float32)
    mean = jnp.mean(x, axis=-1, keepdims=True)
    var = jnp.mean((x - mean) ** 2, axis=-1, keepdims=True)
    return (x - mean) * jax.lax.rsqrt(var + LN_EPS) * gamma + beta


def _gelu(x):
    if GELU_APPROXIMATE:
        # tanh approximation: cubic on the VPU, tanh on the otherwise-idle EUP slot.
        return 0.5 * x * (1.0 + jnp.tanh(0.7978845608028654 * (x + 0.044715 * x * x * x)))
    return 0.5 * x * (1.0 + jax.lax.erf(x * (2.0 ** -0.5)))


# ----------------------------------------------------------------------------- kernels


def embed_kernel(patches_ref, wp_ref, add_ref, g_ref, b_ref, out_ref):
    """Patch-embed matmul + (cls/pos fused additive term) + ln_pre, one image.

    patches_ref: (Sp, Kp) bf16  row 0 is the (zero) cls slot, trailing rows/cols are pad.
    wp_ref:      (Kp, D)  bf16  zero-padded rows beyond the real K.
    add_ref:     (Sp, D)  f32   positional embedding (+ class embedding on row 0).
    g_ref/b_ref: (1, D)   f32   ln_pre affine.
    out_ref:     (Sp, D)  f32
    """
    x = jnp.dot(patches_ref[...], wp_ref[...], preferred_element_type=jnp.float32)
    x = x + add_ref[...]
    out_ref[...] = _layernorm(x, g_ref[...], b_ref[...])


def blocks_kernel(num_heads, q_tile,
                  x_in_ref, kbias_ref,
                  wqkv_ref, bqkv_ref, wo_ref, bo_ref,
                  ln1g_ref, ln1b_ref, ln2g_ref, ln2b_ref,
                  w1_ref, b1_ref, w2_ref, b2_ref,
                  out_ref, resid_ref):
    """One grid step = one (image b, layer l) ResidualAttentionBlock.

    grid = (B, L), L innermost.  The residual stream (Sp, D) f32 is carried in the
    VMEM scratch `resid_ref` across the L axis; layer weights are per-l blocks so
    the pipeline prefetches layer l+1's weights behind layer l's compute.
    """
    l = pl.program_id(1)

    @pl.when(l == 0)
    def _():
        resid_ref[...] = x_in_ref[...]        # fresh image: residual := ln_pre output

    x = resid_ref[...]                        # (Sp, D) f32
    Sp, D = x.shape
    H = num_heads
    Dh = D // H

    kbias = kbias_ref[...]                    # (1, Sp) f32: 0 for real keys, -1e30 for pad

    # ---- attention inputs for the whole image (K/V are needed by every q tile) ----
    h = _layernorm(x, ln1g_ref[...], ln1b_ref[...]).astype(jnp.bfloat16)
    # 1/sqrt(Dh) is folded into the q columns of wqkv/bqkv on the host.
    qkv = (jnp.dot(h, wqkv_ref[...], preferred_element_type=jnp.float32)
           + bqkv_ref[...]).astype(jnp.bfloat16)          # (Sp, 3D) bf16

    wo = wo_ref[...]
    bo = bo_ref[...]
    ln2g = ln2g_ref[...]
    ln2b = ln2b_ref[...]
    w1 = w1_ref[...]
    b1 = b1_ref[...]
    w2 = w2_ref[...]
    b2 = b2_ref[...]

    # ---- query-row tiles: keeps (H, Tq, Sp) scores and (Tq, F) MLP acts small ------
    for s0 in range(0, Sp, q_tile):
        ts = min(q_tile, Sp - s0)             # Sp and q_tile are multiples of 8
        x_c = x[s0:s0 + ts]                   # (ts, D) f32 (pre-attention residual rows)

        # per-head attention from static lane slices of qkv: no head-major relayouts.
        o_parts = []
        for hh in range(H):
            c0 = hh * Dh
            qh = qkv[s0:s0 + ts, c0:c0 + Dh]              # (ts, Dh) bf16
            kh = qkv[:, D + c0:D + c0 + Dh]               # (Sp, Dh) bf16
            vh = qkv[:, 2 * D + c0:2 * D + c0 + Dh]       # (Sp, Dh) bf16
            s = jax.lax.dot_general(qh, kh, (((1,), (1,)), ((), ())),
                                    preferred_element_type=jnp.float32)  # (ts, Sp)
            s = s + kbias                                 # mask padded key columns
            s = s - jnp.max(s, axis=-1, keepdims=True)
            p = jnp.exp(s)
            p = p * pl.reciprocal(jnp.sum(p, axis=-1, keepdims=True), approx=True)
            o_parts.append(jnp.dot(p.astype(jnp.bfloat16), vh,
                                   preferred_element_type=jnp.float32))  # (ts, Dh)
        o = jnp.concatenate(o_parts, axis=-1).astype(jnp.bfloat16)       # (ts, D)

        # single K=D output projection + residual add
        x1 = x_c + jnp.dot(o, wo, preferred_element_type=jnp.float32) + bo

        # ---- MLP branch ----------------------------------------------------------
        h2 = _layernorm(x1, ln2g, ln2b).astype(jnp.bfloat16)
        m = jnp.dot(h2, w1, preferred_element_type=jnp.float32) + b1
        m = _gelu(m)
        y = x1 + jnp.dot(m.astype(jnp.bfloat16), w2,
                         preferred_element_type=jnp.float32) + b2        # (ts, D) f32

        resid_ref[s0:s0 + ts, :] = y          # carry residual to the next layer
        out_ref[s0:s0 + ts, :] = y            # this layer's feature rows (lane-dense)


# ----------------------------------------------------------------------------- wrappers


def run_embed(patches, wp, add, g, b):
    B, Sp, Kp = patches.shape
    D = wp.shape[1]
    params = (wp, add, g, b)
    param_bytes = sum(int(a.size) * a.dtype.itemsize for a in params)

    flops = 2 * B * Sp * Kp * D
    bytes_accessed = (int(patches.size) * patches.dtype.itemsize
                      + param_bytes + B * Sp * D * 4)
    vmem = _vmem_limit(2 * (Sp * Kp * 2 + Sp * D * 4) + 2 * param_bytes + 2 * Sp * D * 4)

    return pl.pallas_call(
        embed_kernel,
        grid=(B,),
        in_specs=[
            pl.BlockSpec((None, Sp, Kp), lambda i: (i, 0, 0)),
            pl.BlockSpec((Kp, D), lambda i: (0, 0)),
            pl.BlockSpec((Sp, D), lambda i: (0, 0)),
            pl.BlockSpec((1, D), lambda i: (0, 0)),
            pl.BlockSpec((1, D), lambda i: (0, 0)),
        ],
        out_specs=pl.BlockSpec((None, Sp, D), lambda i: (i, 0, 0)),
        out_shape=jax.ShapeDtypeStruct((B, Sp, D), jnp.float32),
        compiler_params=pltpu.CompilerParams(
            dimension_semantics=("parallel",), vmem_limit_bytes=vmem),
        cost_estimate=pl.CostEstimate(
            flops=int(flops), transcendentals=0, bytes_accessed=int(bytes_accessed)),
    )(patches, *params)


def run_blocks_fused(x, params, num_heads):
    """All L transformer layers in one pallas_call. Returns (L, Sp, B*D) f32 features."""
    B, Sp, D = x.shape
    wqkv = params["wqkv"]
    L = wqkv.shape[0]
    F = params["w1"].shape[2]
    H = num_heads
    kbias = params["kbias"]

    q_tile = min(Sp, 256)   # multiple of 8; bounds live scores/MLP intermediates

    weight_stacks = (params["wqkv"], params["bqkv"], params["wo"], params["bo"],
                     params["ln1g"], params["ln1b"], params["ln2g"], params["ln2b"],
                     params["w1"], params["b1"], params["w2"], params["b2"])
    layer_bytes = sum(int(a.size) * a.dtype.itemsize for a in weight_stacks) // L

    flops = B * L * (2 * Sp * D * 3 * D       # qkv projection
                     + 4 * Sp * Sp * D        # scores + P@V
                     + 2 * Sp * D * D         # output projection
                     + 4 * Sp * D * F)        # MLP
    transcend = B * L * (H * Sp * Sp + Sp * F + H * Sp)
    bytes_accessed = (B * Sp * D * 4                 # embed output (read once per image)
                      + L * layer_bytes              # stacked weights
                      + L * B * Sp * D * 4)          # per-layer features written

    interm = (Sp * 3 * D * 2                          # qkv bf16
              + 2 * H * q_tile * Sp * 4               # scores + probs (f32)
              + q_tile * F * 4                        # MLP activation
              + 6 * q_tile * D * 4)                   # misc per-tile temps
    vmem = _vmem_limit(2 * layer_bytes                # double-buffered layer weights
                       + 4 * Sp * D * 4               # x_in + out blocks (double-buffered)
                       + Sp * D * 4                   # residual scratch
                       + interm)

    layer_spec = lambda shape: pl.BlockSpec((None,) + shape, lambda b, l: (l, 0, 0))

    out = pl.pallas_call(
        functools.partial(blocks_kernel, num_heads, q_tile),
        grid=(B, L),                                  # L innermost: residual carried in VMEM
        in_specs=[
            pl.BlockSpec((None, Sp, D), lambda b, l: (b, 0, 0)),   # embed output (per image)
            pl.BlockSpec((1, Sp), lambda b, l: (0, 0)),            # key-padding bias
            layer_spec((D, 3 * D)),                                # wqkv   (per layer)
            layer_spec((1, 3 * D)),                                # bqkv
            layer_spec((D, D)),                                    # wo
            layer_spec((1, D)),                                    # bo
            layer_spec((1, D)),                                    # ln1g
            layer_spec((1, D)),                                    # ln1b
            layer_spec((1, D)),                                    # ln2g
            layer_spec((1, D)),                                    # ln2b
            layer_spec((D, F)),                                    # w1
            layer_spec((1, F)),                                    # b1
            layer_spec((F, D)),                                    # w2
            layer_spec((1, D)),                                    # b2
        ],
        # lane-dense feature slab: block (Sp, D) at columns [b*D, (b+1)*D) of layer l.
        out_specs=pl.BlockSpec((None, Sp, D), lambda b, l: (l, 0, b)),
        out_shape=jax.ShapeDtypeStruct((L, Sp, B * D), jnp.float32),
        scratch_shapes=[pltpu.VMEM((Sp, D), jnp.float32)],         # residual stream
        compiler_params=pltpu.CompilerParams(
            dimension_semantics=("parallel", "arbitrary"),
            vmem_limit_bytes=vmem),
        cost_estimate=pl.CostEstimate(
            flops=int(flops), transcendentals=int(transcend),
            bytes_accessed=int(bytes_accessed)),
    )(x, kbias, *weight_stacks)
    return out


def extract_patches_padded(images_nchw, ps, s_pad, k_pad):
    """NCHW -> (B, s_pad, k_pad) bf16, row-major patch order (matches conv1+flatten).

    Row 0 is the (zero) class-token slot; rows beyond 1+num_patches and columns
    beyond C*ps*ps are zero pad, so the padded matmul is exact.  Built directly in
    bf16 (no f32 temporary + full-array cast).
    """
    B, C, H, W = images_nchw.shape
    gh, gw = H // ps, W // ps
    x = images_nchw.reshape(B, C, gh, ps, gw, ps)
    x = x.transpose(0, 2, 4, 1, 3, 5).reshape(B, gh * gw, C * ps * ps).astype(jnp.bfloat16)
    out = jnp.zeros((B, s_pad, k_pad), jnp.bfloat16)
    out = out.at[:, 1:gh * gw + 1, :C * ps * ps].set(x)
    return out


def init_params(key, *, channels, patch_size, width, heads, layers, num_patches):
    """Deterministic synthetic weights with open_clip-style shapes.

    Matmul weights are bf16 and pre-transposed to right-multiply form; per-layer
    weights are stacked with a leading L axis for the fused (B, L)-grid kernel.
    """
    D, F, H = width, 4 * width, heads
    assert D % H == 0 and D % 128 == 0, "width must be a multiple of 128 and of heads"
    Dh = D // H
    K = channels * patch_size * patch_size
    Kp = _round_up(K, 128)          # aligned MXU contraction dim for the patch embed
    S = num_patches + 1
    Sp = _round_up(S, 8)            # 8-aligned token dim (full-tile sublane stores)
    keys = jax.random.split(key, 3 + 4 * layers)
    scale = D ** -0.5
    attn_scale = Dh ** -0.5

    conv_w = 0.02 * jax.random.normal(keys[0], (D, channels, patch_size, patch_size),
                                      jnp.float32)
    wp = jnp.zeros((Kp, D), jnp.float32).at[:K].set(conv_w.reshape(D, K).T)

    cls = scale * jax.random.normal(keys[1], (1, D), jnp.float32)
    pos = scale * jax.random.normal(keys[2], (S, D), jnp.float32)
    # positional embedding padded to Sp rows, class embedding folded into row 0.
    embed_add = jnp.zeros((Sp, D), jnp.float32).at[:S].set(pos).at[0].add(cls[0])

    # additive key-padding bias (0 for real keys, -1e30 for padded key columns).
    kbias = jnp.where(jnp.arange(Sp)[None, :] < S, 0.0, -1e30).astype(jnp.float32)

    wqkv, bqkv, wo, bo = [], [], [], []
    ln1g, ln1b, ln2g, ln2b = [], [], [], []
    w1, b1, w2, b2 = [], [], [], []
    for li in range(layers):
        k0, k1, k2, k3 = keys[3 + 4 * li:3 + 4 * (li + 1)]
        # nn.MultiheadAttention in_proj_weight is (3D, D); stored transposed (D, 3D).
        wq = 0.02 * jax.random.normal(k0, (D, 3 * D), jnp.float32)
        wq = wq.at[:, :D].multiply(attn_scale)          # fold 1/sqrt(Dh) into q columns
        bq = jnp.zeros((1, 3 * D), jnp.float32)         # (scale-fold is a no-op on zeros)
        wqkv.append(wq.astype(jnp.bfloat16))
        bqkv.append(bq)
        wo.append((0.02 * jax.random.normal(k1, (D, D), jnp.float32)).astype(jnp.bfloat16))
        bo.append(jnp.zeros((1, D), jnp.float32))
        ln1g.append(jnp.ones((1, D), jnp.float32))
        ln1b.append(jnp.zeros((1, D), jnp.float32))
        ln2g.append(jnp.ones((1, D), jnp.float32))
        ln2b.append(jnp.zeros((1, D), jnp.float32))
        w1.append((0.02 * jax.random.normal(k2, (D, F), jnp.float32)).astype(jnp.bfloat16))
        b1.append(jnp.zeros((1, F), jnp.float32))
        w2.append((0.02 * jax.random.normal(k3, (F, D), jnp.float32)).astype(jnp.bfloat16))
        b2.append(jnp.zeros((1, D), jnp.float32))

    stack = lambda xs: jnp.stack(xs, axis=0)
    return {
        "patch_size": patch_size, "seq": S, "seq_pad": Sp, "k_pad": Kp,
        "wp": wp.astype(jnp.bfloat16), "embed_add": embed_add,
        "ln_pre_g": jnp.ones((1, D), jnp.float32), "ln_pre_b": jnp.zeros((1, D), jnp.float32),
        "kbias": kbias,
        "wqkv": stack(wqkv), "bqkv": stack(bqkv), "wo": stack(wo), "bo": stack(bo),
        "ln1g": stack(ln1g), "ln1b": stack(ln1b), "ln2g": stack(ln2g), "ln2b": stack(ln2b),
        "w1": stack(w1), "b1": stack(b1), "w2": stack(w2), "b2": stack(b2),
    }


def coca_vision_tower_forward(images_nchw, params, num_heads):
    """Equivalent of COCAVisionTower.forward_visual + feature_select('patch').

    Returns a list (one entry per transformer block) of (S, B, D) f32 features (LND).
    """
    # TODO(synk): the non-list `forward` branch calls the CoCa attentional pooler
    # (self.vision_tower(images)[1]); only the explicit forward_coca_visual path
    # (per-block intermediate features) is implemented here.
    S, Sp = params["seq"], params["seq_pad"]
    D = params["wp"].shape[1]
    B = images_nchw.shape[0]

    patches = extract_patches_padded(images_nchw.astype(jnp.float32),
                                     params["patch_size"], Sp, params["k_pad"])
    x = run_embed(patches, params["wp"], params["embed_add"],
                  params["ln_pre_g"], params["ln_pre_b"])              # (B, Sp, D) f32

    feats_all = run_blocks_fused(x, params, num_heads)                 # (L, Sp, B*D) f32
    L = feats_all.shape[0]
    # free reshape (row-major split of the lane-dense last dim) + one slice: no transpose.
    feats_all = feats_all.reshape(L, Sp, B, D)[:, :S]                  # (L, S, B, D), LND
    return [feats_all[l] for l in range(L)]


# ----------------------------------------------------------------------------- main


if __name__ == "__main__":
    # Small synthetic config (real CoCa ViT-L/14: width=1024, heads=16, patch=14, 224x224).
    B, C, IMG, PS = 2, 3, 16, 4
    WIDTH, HEADS, LAYERS = 128, 4, 3
    P = (IMG // PS) ** 2          # 16 patches
    S = P + 1                     # + class token

    key = jax.random.PRNGKey(0)
    k_img, k_par = jax.random.split(key)
    images = jax.random.normal(k_img, (B, C, IMG, IMG), jnp.float32)   # NCHW, like PyTorch

    params = init_params(k_par, channels=C, patch_size=PS, width=WIDTH,
                         heads=HEADS, layers=LAYERS, num_patches=P)

    feats = coca_vision_tower_forward(images, params, HEADS)
    feats = [jax.block_until_ready(f) for f in feats]

    assert len(feats) == LAYERS
    for f in feats:
        assert f.shape == (S, B, WIDTH), f.shape
        assert f.dtype == jnp.float32
        assert bool(jnp.all(jnp.isfinite(f)))

    print("KERNEL_OK")
</pallas_src>

<mosaic_0001>
module attributes {stable_mosaic.version = 11 : i64} {
  func.func @embed_kernel(%arg0: i32, %arg1: memref<1x24x128xbf16, #tpu.memory_space<vmem>>, %arg2: memref<128x128xbf16, #tpu.memory_space<vmem>>, %arg3: memref<24x128xf32, #tpu.memory_space<vmem>>, %arg4: memref<1x128xf32, #tpu.memory_space<vmem>>, %arg5: memref<1x128xf32, #tpu.memory_space<vmem>>, %arg6: memref<1x24x128xf32, #tpu.memory_space<vmem>>) attributes {dimension_semantics = [#tpu.dimension_semantics<parallel>], iteration_bounds = array<i64: 2>, scalar_prefetch = 0 : i64, scratch_operands = 0 : i64, tpu.core_type = #tpu.core_type<tc>, window_params = [{transform_indices = @transform_0, window_bounds = array<i64: 1, 24, 128>}, {pipeline_mode = #tpu.pipeline_mode<synchronous>, transform_indices = @transform_1, window_bounds = array<i64: 128, 128>}, {pipeline_mode = #tpu.pipeline_mode<synchronous>, transform_indices = @transform_2, window_bounds = array<i64: 24, 128>}, {pipeline_mode = #tpu.pipeline_mode<synchronous>, transform_indices = @transform_3, window_bounds = array<i64: 1, 128>}, {pipeline_mode = #tpu.pipeline_mode<synchronous>, transform_indices = @transform_4, window_bounds = array<i64: 1, 128>}, {transform_indices = @transform_5, window_bounds = array<i64: 1, 24, 128>}]} {
    %c0 = arith.constant 0 : index
    %c0_0 = arith.constant 0 : index
    %c0_1 = arith.constant 0 : index
    %0 = vector.load %arg1[%c0, %c0_0, %c0_1] : memref<1x24x128xbf16, #tpu.memory_space<vmem>>, vector<1x24x128xbf16>
    %1 = vector.shape_cast %0 : vector<1x24x128xbf16> to vector<24x128xbf16>
    %c0_2 = arith.constant 0 : index
    %c0_3 = arith.constant 0 : index
    %2 = vector.load %arg2[%c0_2, %c0_3] : memref<128x128xbf16, #tpu.memory_space<vmem>>, vector<128x128xbf16>
    %cst = arith.constant dense<0.000000e+00> : vector<24x128xf32>
    %3 = tpu.matmul %1, %2, %cst {dimension_numbers = #tpu.dot_dimension_numbers<[1], [0], [0], [1], [0, 0, 1, 1], [], []>} : vector<24x128xbf16>, vector<128x128xbf16>, vector<24x128xf32> -> vector<24x128xf32>
    %c0_4 = arith.constant 0 : index
    %c0_5 = arith.constant 0 : index
    %4 = vector.load %arg3[%c0_4, %c0_5] : memref<24x128xf32, #tpu.memory_space<vmem>>, vector<24x128xf32>
    %5 = arith.addf %3, %4 : vector<24x128xf32>
    %c0_6 = arith.constant 0 : index
    %c0_7 = arith.constant 0 : index
    %6 = vector.load %arg4[%c0_6, %c0_7] : memref<1x128xf32, #tpu.memory_space<vmem>>, vector<1x128xf32>
    %c0_8 = arith.constant 0 : index
    %c0_9 = arith.constant 0 : index
    %7 = vector.load %arg5[%c0_8, %c0_9] : memref<1x128xf32, #tpu.memory_space<vmem>>, vector<1x128xf32>
    %cst_10 = arith.constant dense<0.000000e+00> : vector<24xf32>
    %8 = vector.multi_reduction <add>, %5, %cst_10 [1] : vector<24x128xf32> to vector<24xf32>
    %9 = vector.shape_cast %8 : vector<24xf32> to vector<24x1xf32>
    %cst_11 = arith.constant 1.280000e+02 : f32
    %10 = vector.broadcast %cst_11 : f32 to vector<24x1xf32>
    %11 = arith.divf %9, %10 : vector<24x1xf32>
    %12 = vector.broadcast %11 : vector<24x1xf32> to vector<24x128xf32>
    %13 = arith.subf %5, %12 : vector<24x128xf32>
    %14 = arith.mulf %13, %13 : vector<24x128xf32>
    %cst_12 = arith.constant dense<0.000000e+00> : vector<24xf32>
    %15 = vector.multi_reduction <add>, %14, %cst_12 [1] : vector<24x128xf32> to vector<24xf32>
    %16 = vector.shape_cast %15 : vector<24xf32> to vector<24x1xf32>
    %cst_13 = arith.constant 1.280000e+02 : f32
    %17 = vector.broadcast %cst_13 : f32 to vector<24x1xf32>
    %18 = arith.divf %16, %17 : vector<24x1xf32>
    %19 = vector.broadcast %11 : vector<24x1xf32> to vector<24x128xf32>
    %20 = arith.subf %5, %19 : vector<24x128xf32>
    %cst_14 = arith.constant 9.99999974E-6 : f32
    %21 = vector.broadcast %cst_14 : f32 to vector<24x1xf32>
    %22 = arith.addf %18, %21 : vector<24x1xf32>
    %23 = math.rsqrt %22 : vector<24x1xf32>
    %24 = vector.broadcast %23 : vector<24x1xf32> to vector<24x128xf32>
    %25 = arith.mulf %20, %24 : vector<24x128xf32>
    %26 = vector.broadcast %6 : vector<1x128xf32> to vector<24x128xf32>
    %27 = arith.mulf %25, %26 : vector<24x128xf32>
    %28 = vector.broadcast %7 : vector<1x128xf32> to vector<24x128xf32>
    %29 = arith.addf %27, %28 : vector<24x128xf32>
    %c0_15 = arith.constant 0 : index
    %c0_16 = arith.constant 0 : index
    %c0_17 = arith.constant 0 : index
    %30 = vector.load %arg6[%c0_15, %c0_16, %c0_17] : memref<1x24x128xf32, #tpu.memory_space<vmem>>, vector<1x24x128xf32>
    %31 = vector.shape_cast %30 : vector<1x24x128xf32> to vector<24x128xf32>
    %32 = vector.shape_cast %29 : vector<24x128xf32> to vector<1x24x128xf32>
    tpu.vector_store %arg6[%c0_15, %c0_16, %c0_17], %32 {strides = array<i32>} : memref<1x24x128xf32, #tpu.memory_space<vmem>>, vector<1x24x128xf32>,
    return
  }
  func.func @transform_0(%arg0: i32) -> (i32, i32, i32) {
    %c0_i32 = arith.constant 0 : i32
    %c0_i32_0 = arith.constant 0 : i32
    %c0_i32_1 = arith.constant 0 : i32
    return %arg0, %c0_i32, %c0_i32_0 : i32, i32, i32
  }
  func.func @transform_1(%arg0: i32) -> (i32, i32) {
    %c0_i32 = arith.constant 0 : i32
    %c0_i32_0 = arith.constant 0 : i32
    %c0_i32_1 = arith.constant 0 : i32
    return %c0_i32, %c0_i32_0 : i32, i32
  }
  func.func @transform_2(%arg0: i32) -> (i32, i32) {
    %c0_i32 = arith.constant 0 : i32
    %c0_i32_0 = arith.constant 0 : i32
    %c0_i32_1 = arith.constant 0 : i32
    return %c0_i32, %c0_i32_0 : i32, i32
  }
  func.func @transform_3(%arg0: i32) -> (i32, i32) {
    %c0_i32 = arith.constant 0 : i32
    %c0_i32_0 = arith.constant 0 : i32
    %c0_i32_1 = arith.constant 0 : i32
    return %c0_i32, %c0_i32_0 : i32, i32
  }
  func.func @transform_4(%arg0: i32) -> (i32, i32) {
    %c0_i32 = arith.constant 0 : i32
    %c0_i32_0 = arith.constant 0 : i32
    %c0_i32_1 = arith.constant 0 : i32
    return %c0_i32, %c0_i32_0 : i32, i32
  }
  func.func @transform_5(%arg0: i32) -> (i32, i32, i32) {
    %c0_i32 = arith.constant 0 : i32
    %c0_i32_0 = arith.constant 0 : i32
    %c0_i32_1 = arith.constant 0 : i32
    return %arg0, %c0_i32, %c0_i32_0 : i32, i32, i32
  }
}

</mosaic_0001>

<bundles_post_ra>
// kernel: tpu_custom_call.1
= control target key start
LH: loop header
LB: loop body
LE: loop exit
PB: predicated region body
PF: predicated region fallthrough
CT: control target
= control target key end

     0   :  { %10 = vsyncpa [#allocation3], 0  ;;  %s1157_s0 = inlined_call_operand.hbm [shape: bf16[2,24,128], index: 0, kind: input, shape index: {}]   ;;  %s1158_s1 = inlined_call_operand.hbm [shape: bf16[128,128], index: 1, kind: input, shape index: {}]   ;;  %s1159_s2 = inlined_call_operand.hbm [shape: f32[24,128], index: 2, kind: input, shape index: {}]   ;;  %s1160_s3 = inlined_call_operand.vmem [shape: f32[1,128], index: 3, kind: input, shape index: {}]   ;;  %s1161_s4 = inlined_call_operand.vmem [shape: f32[1,128], index: 4, kind: input, shape index: {}]   ;;  %s1162_s5 = inlined_call_operand.hbm [shape: f32[2,24,128], index: 5, kind: output, shape index: {}]  }
   0x1   :  { %12 = vsyncpa [#allocation3 + $0x1], 0 }
   0x2   :  { %13 = vsyncpa [#allocation6], 0 }
   0x3   :  { %14 = vsyncpa [#allocation4], 0 }
   0x4   :  { %16 = vsyncpa [#allocation4 + $0x1], 0  ;;  %s910_s18 = smov 0   ;;  %s912_s19 = smov 0  }
   0x5   :  { %s914_s20 = smov 0   ;;  %s916_s21 = smov 0  }
   0x6 LB: > { %s931_s22 = sadd.s32 4294967295, %s868_s21   ;;  %s564_s23 = sadd.s32 4294967294, %s868_s21   ;;  %s868_s21 = sphi %s916_s21, %s1184_s21   ;;  %s864_s20 = sphi %s914_s20, %s1183_s20   ;;  %s860_s19 = sphi %s912_s19, %s1182_s19   ;;  %s856_s18 = sphi %s910_s18, %s1181_s18  }
   0x7   : > { %p42_p0 = scmp.ne.s32.totalorder %s860_s19, %s856_s18  ;;  %p1163_p1 = scmp.eq.s32.totalorder %s931_s22, 0 }
   0x8   : > { %p156_p3 = scmp.eq.s32.totalorder %s564_s23, 1  ;;  %p565_p5 = scmp.ge.s32.totalorder %s868_s21, 1 }
   0x9   : > { %p940_p4 = por %p1163_p1, %p42_p0  ;;  %p163_p7 = scmp.lt.s32.totalorder %s868_s21, 3 }
   0xa   : > { %p945_p6 = por %p156_p3, %p42_p0  ;;  %s870_s27 = smov [#allocation5]  }
   0xb   : > { %s1167_s24 = scalar_select %p940_p4, 1, 0 }
   0xc   : > { %s1168_s25 = scalar_select %p945_p6, 1, 0 }
   0xd   : > { %p950_p8 = pnand %p565_p5, %p163_p7  ;;  %s175_s28 = sshll.u32 %s870_s27, 4  ;;  %s954_s28 = int_to_ptr.vmem [resolvable:$true] %s175_s28 }
   0xe   : > { %s871_s30 = smov [#allocation7]   ;;  %s712_s9 = scalar_lea.hbm %s1158_s1, 1024 }
   0xf   : > { %p635_p9 = pneg %p950_p8  ;;  %s188_s6 = sshll.u32 %s871_s30, 4  ;;  %s965_s6 = int_to_ptr.vmem [resolvable:$true] %s188_s6 }
  0x10   : > { %p713_p12 = scmp.ne.s32.totalorder %s1158_s1, %s712_s9  ;;  %p719_p5 = scmp.lt.u32.totalorder %s712_s9, %s1158_s1 }
  0x11   : > { %p961_p11 = pnand %p635_p9, %p1163_p1 }
  0x13   : > { %p714_p13 = pneg %p961_p11 }
  0x15   : > { %p715_p0 = pnand %p714_p13, %p713_p12 }
  0x17   : > { %p716_p3 = pneg %p715_p0 }
  0x19   : > { %p721_p7 = pnand %p719_p5, %p716_p3 }
  0x1b   : > { %724 = shalt.err (!%p721_p7)
}
  0x1c   : > { %s725_s14 = scalar_lea.vmem %s954_s28, 1024  ;;  %p733_p2 = scmp.lt.s32.totalorder %s954_s28, %s954_s28 }
  0x1d   : > { %p726_p9 = scmp.ne.s32.totalorder %s954_s28, %s725_s14  ;;  %p734_p12 = scmp.lt.s32.totalorder %s725_s14, %s725_s14 }
  0x1f   : > { %p728_p10 = pnand %p726_p9, %p714_p13  ;;  %p735_p0 = por %p734_p12, %p733_p2 }
  0x21   : > { %p729_p1 = pneg %p728_p10 }
  0x23   : > { %p736_p6 = pnand %p735_p0, %p729_p1 }
  0x25   : > { %739 = shalt.err (!%p736_p6)
}
  0x26   : > { %s1164_s15 = smov 64   ;;  %s873_s16 = smov 4  }
  0x27   : > { %638 = dma.hbm_to_vmem [thread:$0]  (!%p961_p11), %s1158_s1, 1024, %s954_s28, [#allocation6], %s1164_s15, %s1164_s15, %s873_s16  }
  0x28   : > { %s740_s7 = scalar_lea.hbm %s1159_s2, 384 }
  0x29   : > { %p741_p1 = scmp.ne.s32.totalorder %s1159_s2, %s740_s7  ;;  %p747_p10 = scmp.lt.u32.totalorder %s740_s7, %s1159_s2 }
  0x2b   : > { %p743_p2 = pnand %p741_p1, %p714_p13 }
  0x2d   : > { %p744_p6 = pneg %p743_p2 }
  0x2f   : > { %p749_p3 = pnand %p747_p10, %p744_p6 }
  0x31   : > { %752 = shalt.err (!%p749_p3)
}
  0x32   : > { %s753_s28 = scalar_lea.vmem %s965_s6, 384  ;;  %p761_p12 = scmp.lt.s32.totalorder %s965_s6, %s965_s6 }
  0x33   : > { %p754_p5 = scmp.ne.s32.totalorder %s965_s6, %s753_s28  ;;  %p762_p0 = scmp.lt.s32.totalorder %s753_s28, %s753_s28 }
  0x35   : > { %p756_p7 = pnand %p754_p5, %p714_p13  ;;  %p763_p1 = por %p762_p0, %p761_p12 }
  0x37   : > { %p757_p9 = pneg %p756_p7 }
  0x39   : > { %p764_p2 = pnand %p763_p1, %p757_p9 }
  0x3b   : > { %767 = shalt.err (!%p764_p2)
}
  0x3c   : > { %s874_s12 = smov 128   ;;  %s875_s13 = smov 8  }
  0x3d   : > { %641 = dma.hbm_to_vmem [thread:$0]  (!%p961_p11), %s1159_s2, 384, %s965_s6, [#allocation6], %s874_s12, %s874_s12, %s875_s13  }
  0x3e   : > { %s1023_s23 = sadd.s32 1, %s868_s21   ;;  %s29_s30 = sadd.s32 1, %s864_s20 }
  0x3f   : > { %s26_s27 = ssub.s32 %s868_s21, %s1023_s23  ;;  %p36_p6 = scmp.ne.s32.totalorder %s864_s20, %s860_s19 }
  0x40   : > { %p27_p13 = scmp.eq.s32.totalorder %s26_s27, 0  ;;  %p37_p10 = scmp.eq.s32.totalorder %s868_s21, 0 }
  0x41   : > { %p1171_p5 = scmp.eq.s32.totalorder %s931_s22, 1  ;;  %p652_p9 = scmp.lt.s32.totalorder %s868_s21, 2 }
  0x42   : > { %s1032_s7 = scalar_select %p27_p13, %s864_s20, %s29_s30  }
  0x43   : > { %p38_p3 = por %p37_p10, %p36_p6  ;;  %p1036_p7 = por %p1171_p5, %p36_p6 }
  0x44   : > { %s208_s29 = sand.u32 1, %s864_s20   ;;  %s619_s6 = smul.u32 192, %s868_s21 }
  0x45   : > { %s1172_s8 = scalar_select %p1036_p7, 1, 0 }
  0x46   : > { %s618_s9 = smul.u32 12, %s208_s29  ;;  %p1043_p11 = pnand %p652_p9, %p38_p3 }
  0x47   : > { %s1050_s12 = scalar_lea.hbm %s1157_s0, %s619_s6  ;;  %s1054_s17 = scalar_lea.sflag [#allocation3], %s208_s29 }
  0x48   : > { %s212_s13 = scalar_lea.vmem [#allocation2], %s618_s9  ;;  %s768_s27 = scalar_lea.hbm %s1050_s12, 192 }
  0x49   : > { %s219_s14 = sshll.u32 %s212_s13, 4  ;;  %p769_p12 = scmp.ne.s32.totalorder %s1050_s12, %s768_s27  ;;  %s1052_s14 = int_to_ptr.vmem [resolvable:$true] %s219_s14 }
  0x4a   : > { %p770_p0 = pneg %p1043_p11  ;;  %s773_s11 = scalar_lea.hbm %s1157_s0, 384 }
  0x4b   : > { %p774_p13 = scmp.lt.u32.totalorder %s1050_s12, %s1157_s0  ;;  %p775_p6 = scmp.lt.u32.totalorder %s773_s11, %s768_s27 }
  0x4c   : > { %p771_p1 = pnand %p770_p0, %p769_p12  ;;  %p777_p3 = scmp.lt.u32.totalorder %s768_s27, %s1050_s12 }
  0x4d   : > { %p776_p10 = por %p775_p6, %p774_p13 }
  0x4e   : > { %p772_p2 = pneg %p771_p1 }
  0x4f   : > { %p778_p5 = por %p777_p3, %p776_p10 }
  0x51   : > { %p779_p9 = pnand %p778_p5, %p772_p2 }
  0x53   : > { %782 = shalt.err (!%p779_p9)
}
  0x54   : > { %s783_s29 = scalar_lea.vmem %s1052_s14, 192  ;;  %s876_s9 = smov [#allocation2]  }
  0x55   : > { %p784_p12 = scmp.ne.s32.totalorder %s1052_s14, %s783_s29  ;;  %s788_s13 = sshll.u32 %s876_s9, 4  ;;  %s789_s13 = int_to_ptr.vmem [resolvable:$false] %s788_s13 }
  0x56   : > { %s790_s15 = scalar_lea.vmem %s789_s13, 384  ;;  %p791_p4 = scmp.lt.s32.totalorder %s1052_s14, %s789_s13 }
  0x57   : > { %p786_p1 = pnand %p784_p12, %p770_p0  ;;  %p792_p13 = scmp.lt.s32.totalorder %s790_s15, %s783_s29 }
  0x59   : > { %p787_p7 = pneg %p786_p1  ;;  %p793_p6 = por %p792_p13, %p791_p4 }
  0x5b   : > { %p794_p10 = pnand %p793_p6, %p787_p7 }
  0x5d   : > { %797 = shalt.err (!%p794_p10)
}
  0x5e   : > { %s1174_s27 = smov 64   ;;  %231 = sbr.rel (%p950_p8) target bundleno = 684 (0x2ac), region = 40 }
  0x5f   : > { %645 = dma.hbm_to_vmem [thread:$0]  (!%p1043_p11), %s1050_s12, 192, %s1052_s14, %s1054_s17, %s1174_s27, %s1174_s27, %s873_s16  }
  0x60   : > { %s1088_s30 = sand.u32 (!%p950_p8), 1, %s860_s19   ;;  %p1175_p4 = scmp.ne.s32.totalorder (!%p950_p8), %s1167_s24, 0 }
  0x61   : > { %s620_s6 = smul.u32 (!%p950_p8), 12, %s1088_s30  ;;  %s234_s11 = scalar_lea.sflag (!%p950_p8), [#allocation3], %s1088_s30 }
  0x63   : > { %s237_s28 = scalar_lea.vmem (!%p950_p8), [#allocation2], %s620_s6 }
  0x65   : > { %843 = dma.done.wait (%p1175_p4), %s234_s11, 192  }
  0x66   : > { %845 = vsyncadd (%p1175_p4), %s234_s11, 4294967104  ;;  %p1176_p7 = scmp.eq.s32.totalorder %s931_s22, 0 }
  0x68   : > { %847 = dma.done.wait (%p1176_p7), [#allocation6], 1408   ;;  %p1177_p11 = pmov %p1176_p7 }
  0x69   : > { %v696_v0 = vld [vmem:[#allocation5] sm:$0xff]   ;;  %v697_v1 = vld [vmem:[#allocation5 + $0x8] sm:$0xff]   ;;  %v698_v2 = vld [vmem:[#allocation5 + $0x10] sm:$0xff]   ;;  %s621_s16 = smul.u32 24, %s1088_s30  ;;  %p1178_p0 = scmp.ne.s32.totalorder %s1172_s8, 0 }
  0x6a   : > { %849 = vsyncadd (%p1177_p11), [#allocation6], 4294965888  ;;  %598 = vmatprep.subr.bf16.mxu0 %v696_v0  ;;  %v699_v3 = vld [vmem:[#allocation5 + $0x18] sm:$0xff]   ;;  %v700_v5 = vld [vmem:[#allocation5 + $0x20] sm:$0xff]   ;;  %s622_s14 = smul.u32 384, %s931_s22  ;;  %s459_s22 = scalar_lea.sflag [#allocation4], %s1088_s30 }
  0x6b   : > { %599 = vmatpush3.bf16.msra.mxu0 %v696_v0  ;;  %v704_v4 = vld [vmem:[%s237_s28] sm:$0xff]   ;;  %v705_v9 = vld [vmem:[%s237_s28 + $0x8] ss:$0 sps:$4 sm:$0xff]   ;;  %v292_v11 = vld [vmem:[#allocation7] sm:$0xff]  ;;  %s271_s17 = scalar_lea.vmem [#allocation8], %s621_s16  ;;  %s877_s6 = smov [#allocation8]  }
  0x6c   : > { %600 = vmatprep.subr.bf16.mxu0 %v697_v1  ;;  %614 = vmatprep.mubr.bf16.mxu0 %v704_v4  ;;  %v701_v6 = vld [vmem:[#allocation5 + $0x28] sm:$0xff]   ;;  %v702_v7 = vld [vmem:[#allocation5 + $0x30] sm:$0xff]   ;;  %v703_v8 = vld [vmem:[#allocation5 + $0x38] sm:$0xff]   ;;  %s472_s29 = sshll.u32 %s271_s17, 4  ;;  %s1111_s15 = scalar_lea.hbm %s1162_s5, %s622_s14  ;;  %s1113_s29 = int_to_ptr.vmem [resolvable:$true] %s472_s29 }
  0x6d   : > { %v294_v10 = vld [vmem:[#allocation7 + $0x10] sm:$0xff]  ;;  %v293_v18 = vld [vmem:[#allocation7 + $0x8] sm:$0xff]  ;;  %s798_s27 = scalar_lea.vmem %s1113_s29, 384  ;;  %s802_s11 = sshll.u32 %s877_s6, 4  ;;  %s803_s11 = int_to_ptr.vmem [resolvable:$false] %s802_s11 }
  0x6e   : > { %v583_v42 = vld [vmem:[%s1160_s3] ss:$0 sm:$0xff]  ;;  %p799_p8 = scmp.ne.s32.totalorder %s1113_s29, %s798_s27  ;;  %s804_s28 = scalar_lea.vmem %s803_s11, 768 }
  0x6f   : > { %601 = vmatpush3.bf16.msra.mxu0 %v697_v1  ;;  %v584_v44 = vld [vmem:[%s1161_s4] ss:$0 sm:$0xff]  ;;  %p805_p5 = scmp.lt.s32.totalorder %s1113_s29, %s803_s11  ;;  %p806_p9 = scmp.lt.s32.totalorder %s804_s28, %s798_s27 }
  0x70   : > { %602 = vmatprep.subr.bf16.mxu0 %v698_v2  ;;  %p800_p2 = pnand %p799_p8, %p1178_p0 }
  0x71   : > { %p807_p12 = por %p806_p9, %p805_p5 }
  0x72   : > { %p801_p3 = pneg %p800_p2 }
  0x73   : > { %603 = vmatpush3.bf16.msra.mxu0 %v698_v2 }
  0x74   : > { %604 = vmatprep.subr.bf16.mxu0 %v699_v3  ;;  %p808_p1 = pnand %p807_p12, %p801_p3 }
  0x77   : > { %605 = vmatpush3.bf16.msra.mxu0 %v699_v3 }
  0x78   : > { %606 = vmatprep.subr.bf16.mxu0 %v700_v5 }
  0x7b   : > { %607 = vmatpush3.bf16.msra.mxu0 %v700_v5 }
  0x7c   : > { %608 = vmatprep.subr.bf16.mxu0 %v701_v6 }
  0x7f   : > { %609 = vmatpush3.bf16.msra.mxu0 %v701_v6 }
  0x80   : > { %610 = vmatprep.subr.bf16.mxu0 %v702_v7 }
  0x83   : > { %611 = vmatpush3.bf16.msra.mxu0 %v702_v7 }
  0x84   : > { %612 = vmatprep.subr.bf16.mxu0 %v703_v8 }
  0x87   : > { %613 = vmatpush3.bf16.msra.mxu0 %v703_v8 }
  0x8a   : > { %615 = vmatmul.mubr.bf16.vlgmr.msra.gmra.mrb[0].mxu0 %v705_v9 }
 0x15d   : > { %v616_v12 = vpop.f32.mrb[0].mxu0 }
 0x15e   : > { %v396_v13 = vadd.f32 %v616_v12, %v294_v10  ;;  %v387_v14 = vpop.f32.mrb[1].mxu0 }
 0x15f   : > { %v388_v15 = vadd.f32 %v387_v14, %v292_v11  ;;  %v617_v16 = vpop.f32.mrb[2].mxu0 }
 0x160   : > { %407 = vadd.xlane.f32.xlu1 %v396_v13  ;;  %v390_v17 = vpop.f32.mrb[3].mxu0 }
 0x161   : > { %403 = vadd.xlane.f32.xlu0 %v388_v15  ;;  %v391_v19 = vadd.f32 %v390_v17, %v293_v18 }
 0x165   : > { %405 = vadd.xlane.f32.xlu0 %v391_v19 }
 0x1ed   : > { %v408_v20 = vpop.xlane.xlu1 %407 }
 0x1ee   : > { %v404_v21 = vpop.xlane.xlu0 %403  ;;  %v412_v22 = vmul.f32 0.0078125, %v408_v20 }
 0x1ef   : > { %v410_v23 = vmul.f32 0.0078125, %v404_v21 }
 0x1f0   : > { %v415_v26 = vsub.f32 %v396_v13, %v412_v22 }
 0x1f1   : > { %v413_v24 = vsub.f32 %v388_v15, %v410_v23 }
 0x1f2   : > { %v406_v25 = vpop.xlane.xlu0 %405  ;;  %v418_v30 = vmul.f32 %v415_v26, %v415_v26 }
 0x1f3   : > { %v411_v27 = vmul.f32 0.0078125, %v406_v25  ;;  %v416_v28 = vmul.f32 %v413_v24, %v413_v24 }
 0x1f5   : > { %v414_v29 = vsub.f32 %v391_v19, %v411_v27  ;;  %419 = vadd.xlane.f32.xlu1 %v416_v28 }
 0x1f7   : > { %v417_v31 = vmul.f32 %v414_v29, %v414_v29 }
 0x1f9   : > { %423 = vadd.xlane.f32.xlu1 %v418_v30  ;;  %421 = vadd.xlane.f32.xlu0 %v417_v31 }
 0x282   : > { %v420_v32 = vpop.xlane.xlu1 %419 }
 0x283   : > { %v425_v33 = vmul.f32 0.0078125, %v420_v32 }
 0x285   : > { %v428_v34 = vadd.f32 1e-05, %v425_v33 }
 0x286   : > { %v424_v35 = vpop.xlane.xlu1 %423  ;;  %v422_v36 = vpop.xlane.xlu0 %421 }
 0x287   : > { %706 = vrsqrt.f32 %v428_v34  ;;  %v427_v37 = vmul.f32 0.0078125, %v424_v35  ;;  %v426_v38 = vmul.f32 0.0078125, %v422_v36 }
 0x289   : > { %v430_v39 = vadd.f32 1e-05, %v427_v37  ;;  %v429_v40 = vadd.f32 1e-05, %v426_v38 }
 0x28b   : > { %708 = vrsqrt.f32 %v430_v39 }
 0x28c   : > { %710 = vrsqrt.f32 %v429_v40 }
 0x291   : > { %v707_v41 = vpop.eup %706 }
 0x292   : > { %v434_v43 = vmul.f32 %v707_v41, %v413_v24 }
 0x294   : > { %v443_v45 = vmul.f32 %v583_v42, %v434_v43 }
 0x295   : > { %v709_v46 = vpop.eup %708 }
 0x296   : > { %v711_v47 = vpop.eup %710  ;;  %v452_v48 = vadd.f32 %v584_v44, %v443_v45  ;;  %v436_v49 = vmul.f32 %v709_v46, %v415_v26 }
 0x297   : > { %v435_v50 = vmul.f32 %v711_v47, %v414_v29 }
 0x298   : > { %v445_v51 = vmul.f32 %v583_v42, %v436_v49  ;;  %455 = vst [vmem:[%s271_s17] sm:$0xff] %v452_v48 }
 0x299   : > { %v444_v52 = vmul.f32 %v583_v42, %v435_v50 }
 0x29a   : > { %v454_v53 = vadd.f32 %v584_v44, %v445_v51 }
 0x29b   : > { %v453_v54 = vadd.f32 %v584_v44, %v444_v52 }
 0x29c   : > { %457 = vst [vmem:[%s271_s17 + $0x10] sm:$0xff] %v454_v53 }
 0x29d   : > { %456 = vst [vmem:[%s271_s17 + $0x8] sm:$0xff] %v453_v54 }
 0x29e   : > { %811 = shalt.err (!%p808_p1)
}
 0x29f   : > { %s812_s24 = scalar_lea.hbm %s1111_s15, 384  ;;  %s816_s10 = scalar_lea.hbm %s1162_s5, 768 }
 0x2a0   : > { %p813_p13 = scmp.ne.s32.totalorder %s1111_s15, %s812_s24  ;;  %p817_p4 = scmp.lt.u32.totalorder %s1111_s15, %s1162_s5 }
 0x2a1   : > { %p818_p7 = scmp.lt.u32.totalorder %s816_s10, %s812_s24  ;;  %p820_p8 = scmp.lt.u32.totalorder %s812_s24, %s1111_s15 }
 0x2a2   : > { %p814_p6 = pnand %p813_p13, %p1178_p0 }
 0x2a3   : > { %p819_p11 = por %p818_p7, %p817_p4 }
 0x2a4   : > { %p815_p10 = pneg %p814_p6 }
 0x2a5   : > { %p821_p2 = por %p820_p8, %p819_p11 }
 0x2a7   : > { %p822_p3 = pnand %p821_p2, %p815_p10 }
 0x2a9   : > { %825 = shalt.err (!%p822_p3)
}
 0x2aa   : > { %s878_s17 = smov 128   ;;  %s879_s9 = smov 8  }
 0x2ab   : > { %633 = dma.vmem_to_hbm [thread:$0]  (%p1178_p0), %s1113_s29, 384, %s1111_s15, %s459_s22, %s878_s17, %s878_s17, %s879_s9  }
 0x2ac PF: > { %s487_s13 = sand.u32 1, %s856_s18   ;;  %p1179_p5 = scmp.ne.s32.totalorder %s1168_s25, 0 }
 0x2ad   : > { %p1180_p9 = scmp.ge.s32.totalorder %s868_s21, 2  ;;  %s488_s27 = scalar_lea.sflag [#allocation4], %s487_s13 }
 0x2af   : > { %p647_p12 = pnand %p1180_p9, %p1179_p5 }
 0x2b1   : > { %851 = dma.done.wait (!%p647_p12), %s488_s27, 384  }
 0x2b2   : > { %853 = vsyncadd (!%p647_p12), %s488_s27, 4294966912  ;;  %p19_p1 = scmp.ge.s32.totalorder %s1023_s23, 4   ;;  %s1181_s18 = smov %s860_s19 }
 0x2b3   : > { %s1182_s19 = smov %s864_s20  ;;  %s1183_s20 = smov %s1032_s7 }
 0x2b4   : > { %s1184_s21 = smov %s1023_s23  ;;  %21 = sbr.rel (!%p19_p1) target bundleno = 6 (0x6), region = 93 }
 0x2bb   :  { %493 = vsyncpa [#allocation3], 1 }
 0x2bc   :  { %495 = vsyncpa [#allocation3 + $0x1], 1 }
 0x2bd   :  { %496 = vsyncpa [#allocation6], 1 }
 0x2be   :  { %497 = vsyncpa [#allocation4], 1 }
 0x2bf   :  { %499 = vsyncpa [#allocation4 + $0x1], 1 }

</bundles_post_ra>
